<compile_context>
chip_gen: v6e
topology: v6e:2x2x1
jax: 0.10.0
libtpu: 0.0.40
codegen_flags: <defaults>
</compile_context>

<pallas_src>
import math
from functools import partial

import numpy as np
from numpy.polynomial import legendre as npleg
from numpy.polynomial import polynomial as nppoly

import jax
import jax.numpy as jnp
from jax.experimental import pallas as pl
from jax.experimental.pallas import tpu as pltpu


# ----------------------------------------------------------------------------
# Filter construction (numpy, __init__-time only) — legendre base, mirrors get_filter
# ----------------------------------------------------------------------------
def _legendre_shifted_coeffs(n, a, b):
    """Ascending power-basis coefficients of P_n(a*x + b)."""
    c = np.zeros(n + 1, dtype=np.float64)
    c[n] = 1.0
    p = npleg.leg2poly(c)  # ascending coeffs of P_n(y)
    res = np.zeros(n + 1, dtype=np.float64)
    lin = np.array([b, a], dtype=np.float64)
    for j in range(n + 1):
        if p[j] == 0.0:
            continue
        term = np.array([1.0]) if j == 0 else nppoly.polypow(lin, j)
        res[: len(term)] += p[j] * term
    return res


def _get_phi_psi_legendre(k):
    phi_coeff = np.zeros((k, k))
    phi_2x_coeff = np.zeros((k, k))
    for ki in range(k):
        phi_coeff[ki, : ki + 1] = np.sqrt(2 * ki + 1) * _legendre_shifted_coeffs(ki, 2.0, -1.0)
        phi_2x_coeff[ki, : ki + 1] = (
            np.sqrt(2) * np.sqrt(2 * ki + 1) * _legendre_shifted_coeffs(ki, 4.0, -1.0)
        )
    psi1_coeff = np.zeros((k, k))
    psi2_coeff = np.zeros((k, k))

    def _proj_half(prod_):
        prod_ = prod_.copy()
        prod_[np.abs(prod_) < 1e-8] = 0
        n = np.arange(len(prod_))
        return (prod_ * 1.0 / (n + 1) * np.power(0.5, 1 + n)).sum()

    for ki in range(k):
        psi1_coeff[ki, :] = phi_2x_coeff[ki, :]
        for i in range(k):
            a = phi_2x_coeff[ki, : ki + 1]
            b = phi_coeff[i, : i + 1]
            proj_ = _proj_half(np.convolve(a, b))
            psi1_coeff[ki, :] -= proj_ * phi_coeff[i, :]
            psi2_coeff[ki, :] -= proj_ * phi_coeff[i, :]
        for j in range(ki):
            a = phi_2x_coeff[ki, : ki + 1]
            b = psi1_coeff[j, :]
            proj_ = _proj_half(np.convolve(a, b))
            psi1_coeff[ki, :] -= proj_ * psi1_coeff[j, :]
            psi2_coeff[ki, :] -= proj_ * psi2_coeff[j, :]
        a = psi1_coeff[ki, :]
        norm1 = _proj_half(np.convolve(a, a))
        a = psi2_coeff[ki, :]
        prod_ = np.convolve(a, a)
        prod_[np.abs(prod_) < 1e-8] = 0
        n = np.arange(len(prod_))
        norm2 = (prod_ * 1.0 / (n + 1) * (1 - np.power(0.5, 1 + n))).sum()
        norm_ = np.sqrt(norm1 + norm2)
        psi1_coeff[ki, :] /= norm_
        psi2_coeff[ki, :] /= norm_
        psi1_coeff[np.abs(psi1_coeff) < 1e-8] = 0
        psi2_coeff[np.abs(psi2_coeff) < 1e-8] = 0
    return phi_coeff, psi1_coeff, psi2_coeff


def _get_filter_legendre(k):
    phi_coeff, psi1_coeff, psi2_coeff = _get_phi_psi_legendre(k)
    H0 = np.zeros((k, k)); H1 = np.zeros((k, k))
    G0 = np.zeros((k, k)); G1 = np.zeros((k, k))

    y, _ = npleg.leggauss(k)          # roots of P_k on [-1, 1]
    x_m = (y + 1.0) / 2.0             # roots of P_k(2x - 1)
    ym = 2 * x_m - 1.0

    def _legval_n(n, xx):
        c = np.zeros(n + 1); c[n] = 1.0
        return npleg.legval(xx, c)

    leg_der = np.zeros_like(ym)
    for i in np.arange(k - 1, -1, -2):
        leg_der += (2 * i + 1) * _legval_n(i, ym)
    wm = 1.0 / k / leg_der / _legval_n(k - 1, ym)

    def phi_eval(i, xx):
        return nppoly.polyval(xx, phi_coeff[i, :])

    def psi_eval(i, xx):
        mask = (xx <= 0.5) * 1.0
        return (nppoly.polyval(xx, psi1_coeff[i, :]) * mask
                + nppoly.polyval(xx, psi2_coeff[i, :]) * (1 - mask))

    for ki in range(k):
        for kpi in range(k):
            H0[ki, kpi] = 1 / np.sqrt(2) * (wm * phi_eval(ki, x_m / 2) * phi_eval(kpi, x_m)).sum()
            G0[ki, kpi] = 1 / np.sqrt(2) * (wm * psi_eval(ki, x_m / 2) * phi_eval(kpi, x_m)).sum()
            H1[ki, kpi] = 1 / np.sqrt(2) * (wm * phi_eval(ki, (x_m + 1) / 2) * phi_eval(kpi, x_m)).sum()
            G1[ki, kpi] = 1 / np.sqrt(2) * (wm * psi_eval(ki, (x_m + 1) / 2) * phi_eval(kpi, x_m)).sum()
    PHI0 = np.eye(k); PHI1 = np.eye(k)
    for M in (H0, H1, G0, G1):
        M[np.abs(M) < 1e-8] = 0
    return H0, H1, G0, G1, PHI0, PHI1


# ----------------------------------------------------------------------------
# Pallas kernels
# ----------------------------------------------------------------------------
def _matmul_kernel(x_ref, w_ref, o_ref):
    o_ref[...] = jnp.dot(x_ref[...], w_ref[...], preferred_element_type=jnp.float32)


def _matmul_bias_kernel(x_ref, w_ref, b_ref, o_ref):
    o_ref[...] = (jnp.dot(x_ref[...], w_ref[...], preferred_element_type=jnp.float32)
                  + b_ref[...])


_ROW_TILE = 512   # f32 row tile: safe for v7x's 64 MiB VMEM, large enough to amortise grid overhead


def tiled_matmul(x2d, w, bias=None, row_tile=_ROW_TILE):
    """(x2d @ w [+ bias]) with the flattened row axis tiled over a parallel grid.

    x2d: (M, Kin);  w: (Kin, Kout);  bias: (1, Kout) or None.
    Weights/bias stay VMEM-resident across grid steps (index_map -> (0, 0)).
    """
    M, Kin = x2d.shape
    Kout = w.shape[1]
    if M <= row_tile:
        tile, grid_m = M, 1
    else:
        tile = row_tile
        grid_m = pl.cdiv(M, tile)
    Mp = grid_m * tile
    x_in = x2d if Mp == M else jnp.pad(x2d, ((0, Mp - M), (0, 0)))

    in_specs = [pl.BlockSpec((tile, Kin), lambda i: (i, 0)),
                pl.BlockSpec((Kin, Kout), lambda i: (0, 0))]
    if bias is None:
        kernel, args = _matmul_kernel, (x_in, w)
    else:
        in_specs.append(pl.BlockSpec((1, Kout), lambda i: (0, 0)))
        kernel, args = _matmul_bias_kernel, (x_in, w, bias)

    out = pl.pallas_call(
        kernel,
        grid=(grid_m,),
        in_specs=in_specs,
        out_specs=pl.BlockSpec((tile, Kout), lambda i: (i, 0)),
        out_shape=jax.ShapeDtypeStruct((Mp, Kout), jnp.float32),
        compiler_params=pltpu.CompilerParams(
            dimension_semantics=("parallel",),
            vmem_limit_bytes=32 * 1024 * 1024),
    )(*args)
    return out if Mp == M else out[:M]


def _spectral_fused_kernel(x_ref, w_ref, o_ref):
    # x: (l, B, 4ck), w: (l, 4ck, 6ck) -> o: (l, B, 6ck).  One batched MXU dot covers
    # every retained mode and all three spectral operators (A, B, C); real/imag parts
    # are fused via the block weight [[wr, wi], [-wi, wr]].
    o_ref[...] = jax.lax.dot_general(
        x_ref[...], w_ref[...],
        dimension_numbers=(((2,), (1,)), ((0,), (0,))),
        preferred_element_type=jnp.float32)


def spectral_mix(x_stacked, w_block):
    l, B, _ = x_stacked.shape
    six_ck = w_block.shape[-1]
    return pl.pallas_call(
        _spectral_fused_kernel,
        out_shape=jax.ShapeDtypeStruct((l, B, six_ck), jnp.float32),
    )(x_stacked, w_block)


# ----------------------------------------------------------------------------
# MWT_CZ1d forward (Pallas-backed, jitted)
# ----------------------------------------------------------------------------
def _build_spectral_block_weight(params):
    """(alpha, 4ck, 6ck) weight so that [A(d) | B(s) | C(d)] = [rfft(d) | rfft(s)] @ W per mode."""
    def blk(wr, wi):
        wr_t = jnp.transpose(wr, (2, 0, 1))                 # (alpha, ck, ck)
        wi_t = jnp.transpose(wi, (2, 0, 1))
        top = jnp.concatenate([wr_t, wi_t], axis=-1)        # (alpha, ck, 2ck)
        bot = jnp.concatenate([-wi_t, wr_t], axis=-1)
        return jnp.concatenate([top, bot], axis=-2)         # (alpha, 2ck, 2ck)

    WA, WB, WC = blk(*params["A"]), blk(*params["B"]), blk(*params["C"])
    z = jnp.zeros_like(WA)
    row_d = jnp.concatenate([WA, z, WC], axis=-1)           # driven by rfft(d)
    row_s = jnp.concatenate([z, WB, z], axis=-1)            # driven by rfft(s)
    return jnp.concatenate([row_d, row_s], axis=-2)         # (alpha, 4ck, 6ck)


def _rfft_real_imag(x, l):
    """x: (B, N, c, k) -> (l, B, ck) real / imag parts of the first l rFFT modes."""
    B, N, c, k = x.shape
    ck = c * k
    xt = jnp.transpose(x.reshape(B, N, ck), (0, 2, 1))      # (B, ck, N)
    xf = jnp.fft.rfft(xt, axis=-1)[:, :, :l]                # (B, ck, l) complex64
    xr = jnp.transpose(jnp.real(xf), (2, 0, 1)).astype(jnp.float32)
    xi = jnp.transpose(jnp.imag(xf), (2, 0, 1)).astype(jnp.float32)
    return xr, xi


def _spectrum_to_signal(spec_r, spec_i, B, N, c, k, l):
    ck = c * k
    Nf = N // 2 + 1
    spec = jnp.transpose(spec_r + 1j * spec_i, (1, 2, 0))   # (B, ck, l)
    ft = jnp.zeros((B, ck, Nf), dtype=jnp.complex64).at[:, :, :l].set(spec)
    y = jnp.fft.irfft(ft, n=N, axis=-1)                     # (B, ck, N) float32
    return jnp.transpose(y, (0, 2, 1)).reshape(B, N, c, k).astype(jnp.float32)


def spectral_level(d, s, w_block, alpha):
    """Fused sparseKernelFT1d triple:  returns (A(d) + B(s), C(d)) for one level."""
    B, N, c, k = d.shape
    ck = c * k
    l = min(alpha, N // 2 + 1)
    dr, di = _rfft_real_imag(d, l)                          # rfft(d) computed once, shared by A and C
    sr, si = _rfft_real_imag(s, l)
    x_stacked = jnp.concatenate([dr, di, sr, si], axis=-1)  # (l, B, 4ck)
    out = spectral_mix(x_stacked, w_block[:l])              # (l, B, 6ck)
    ud = _spectrum_to_signal(out[..., 0:ck] + out[..., 2 * ck:3 * ck],
                             out[..., ck:2 * ck] + out[..., 3 * ck:4 * ck],
                             B, N, c, k, l)                 # irfft(A(d)) + irfft(B(s)) by linearity
    us = _spectrum_to_signal(out[..., 4 * ck:5 * ck], out[..., 5 * ck:6 * ck],
                             B, N, c, k, l)
    return ud, us


def wavelet_transform(x, ec_ds, k):
    B, N, c, _ = x.shape
    Nh = N // 2
    # even/odd interleave -> last-axis concat via reshape/transpose (fused by XLA under jit)
    xa = jnp.transpose(x.reshape(B, Nh, 2, c, k), (0, 1, 3, 2, 4)).reshape(B * Nh * c, 2 * k)
    out = tiled_matmul(xa, ec_ds)                            # one fused dot: [d | s]
    d = out[:, :k].reshape(B, Nh, c, k)
    s = out[:, k:].reshape(B, Nh, c, k)
    return d, s


def even_odd(x, rc_eo, k):
    B, N, c, ich = x.shape
    out = tiled_matmul(x.reshape(B * N * c, ich), rc_eo)     # one fused dot: [x_e | x_o]
    x_e = out[:, :k].reshape(B, N, c, k)
    x_o = out[:, k:].reshape(B, N, c, k)
    # TODO(synk): the stride-2 interleave could be folded into the matmul out_spec; kept as a
    # jnp stack/reshape since XLA fuses it under jit.
    return jnp.stack([x_e, x_o], axis=2).reshape(B, 2 * N, c, k)


@partial(jax.jit, static_argnames=("alpha", "L"))
def mwt_cz1d_forward(x, params, filters, alpha, L=0):
    B, N, c, k = x.shape
    ns = int(math.floor(math.log2(N)))

    # Fused weights, built once per forward — hoisted out of the level loops.
    w_block = _build_spectral_block_weight(params)                         # (alpha, 4ck, 6ck)
    ec_ds = jnp.concatenate([filters["ec_d"], filters["ec_s"]], axis=1)    # (2k, 2k)
    rc_eo = jnp.concatenate([filters["rc_e"], filters["rc_o"]], axis=1)    # (2k, 2k)

    Ud, Us = [], []
    for _ in range(ns - L):
        d, x = wavelet_transform(x, ec_ds, k)
        ud, us = spectral_level(d, x, w_block, alpha)
        Ud.append(ud)
        Us.append(us)

    Bc, Nc, cc, _ = x.shape
    x = tiled_matmul(x.reshape(Bc * Nc * cc, k), params["T0_w_t"],
                     bias=params["T0_b"]).reshape(Bc, Nc, cc, k)

    for i in range(ns - 1 - L, -1, -1):
        x = x + Us[i]
        x = jnp.concatenate([x, Ud[i]], axis=-1)
        x = even_odd(x, rc_eo, k)
    return x


# ----------------------------------------------------------------------------
# Pure-JAX reference (same math, no Pallas) for validation
# ----------------------------------------------------------------------------
def _ref_forward(x, params, filters, alpha, L=0):
    B, N, c, k = x.shape
    ns = int(math.floor(math.log2(N)))

    def skft(x, wr, wi):
        B, N, c, k = x.shape
        ck = c * k
        xf = jnp.transpose(x.reshape(B, N, ck), (0, 2, 1))
        xfft = jnp.fft.rfft(xf, axis=-1)
        Nf = N // 2 + 1
        l = min(alpha, Nf)
        w = (wr[:, :, :l] + 1j * wi[:, :, :l]).astype(jnp.complex64)
        out = jnp.einsum("bix,iox->box", xfft[:, :, :l], w)
        out_ft = jnp.zeros((B, ck, Nf), jnp.complex64).at[:, :, :l].set(out)
        y = jnp.fft.irfft(out_ft, n=N, axis=-1)
        return jnp.transpose(y, (0, 2, 1)).reshape(B, N, c, k)

    Ud, Us = [], []
    for _ in range(ns - L):
        xa = jnp.concatenate([x[:, ::2], x[:, 1::2]], -1)
        d = xa @ filters["ec_d"]
        x = xa @ filters["ec_s"]
        Ud.append(skft(d, *params["A"]) + skft(x, *params["B"]))
        Us.append(skft(d, *params["C"]))
    x = x @ params["T0_w_t"] + params["T0_b"][0]
    for i in range(ns - 1 - L, -1, -1):
        x = x + Us[i]
        x = jnp.concatenate([x, Ud[i]], -1)
        x_e = x @ filters["rc_e"]
        x_o = x @ filters["rc_o"]
        Bb, Nn, cc, _ = x_e.shape
        x = jnp.stack([x_e, x_o], axis=2).reshape(Bb, 2 * Nn, cc, k)
    return x


# ----------------------------------------------------------------------------
# Main
# ----------------------------------------------------------------------------
if __name__ == "__main__":
    # Module hyper-parameters (defaults of MWT_CZ1d)
    k, alpha, L, c = 3, 5, 0, 1
    B, N = 2, 16
    ck = c * k

    # Wavelet filter buffers (deterministic, from the legendre base construction)
    H0, H1, G0, G1, PHI0, PHI1 = _get_filter_legendre(k)
    H0r = H0 @ PHI0; G0r = G0 @ PHI0
    H1r = H1 @ PHI1; G1r = G1 @ PHI1
    for M in (H0r, H1r, G0r, G1r):
        M[np.abs(M) < 1e-8] = 0
    filters = {
        "ec_s": jnp.asarray(np.concatenate((H0.T, H1.T), axis=0), dtype=jnp.float32),
        "ec_d": jnp.asarray(np.concatenate((G0.T, G1.T), axis=0), dtype=jnp.float32),
        "rc_e": jnp.asarray(np.concatenate((H0r, G0r), axis=0), dtype=jnp.float32),
        "rc_o": jnp.asarray(np.concatenate((H1r, G1r), axis=0), dtype=jnp.float32),
    }

    # Deterministic parameter init (shapes from __init__)
    key = jax.random.PRNGKey(0)
    keys = jax.random.split(key, 10)
    scale = 1.0 / (ck * ck)

    def _cw(kr, ki_):
        return (scale * jax.random.uniform(kr, (ck, ck, alpha), dtype=jnp.float32),
                scale * jax.random.uniform(ki_, (ck, ck, alpha), dtype=jnp.float32))

    bound = 1.0 / math.sqrt(k)
    params = {
        "A": _cw(keys[0], keys[1]),
        "B": _cw(keys[2], keys[3]),
        "C": _cw(keys[4], keys[5]),
        # T0: nn.Linear(k, k); store weight pre-transposed (in, out) + bias as (1, k)
        "T0_w_t": jax.random.uniform(keys[6], (k, k), jnp.float32, -bound, bound),
        "T0_b": jax.random.uniform(keys[7], (1, k), jnp.float32, -bound, bound),
    }

    # Input: (B, N, c, k) matching the PyTorch forward signature
    x = jax.random.normal(keys[8], (B, N, c, k), dtype=jnp.float32)

    out = mwt_cz1d_forward(x, params, filters, alpha=alpha, L=L)
    out = jax.block_until_ready(out)

    ref = jax.block_until_ready(_ref_forward(x, params, filters, alpha, L))
    assert out.shape == (B, N, c, k), out.shape
    assert jnp.all(jnp.isfinite(out))
    max_err = float(jnp.max(jnp.abs(out - ref)))
    assert max_err < 1e-2, f"mismatch vs reference: {max_err}"

    print("KERNEL_OK")
</pallas_src>

<mosaic_0001>
module attributes {stable_mosaic.version = 11 : i64} {
  func.func @_matmul_kernel(%arg0: i32, %arg1: memref<16x6xf32, #tpu.memory_space<vmem>>, %arg2: memref<6x6xf32, #tpu.memory_space<vmem>>, %arg3: memref<16x6xf32, #tpu.memory_space<vmem>>) attributes {dimension_semantics = [#tpu.dimension_semantics<parallel>], iteration_bounds = array<i64: 1>, scalar_prefetch = 0 : i64, scratch_operands = 0 : i64, tpu.core_type = #tpu.core_type<tc>, window_params = [{transform_indices = @transform_0, window_bounds = array<i64: 16, 6>}, {pipeline_mode = #tpu.pipeline_mode<synchronous>, transform_indices = @transform_1, window_bounds = array<i64: 6, 6>}, {transform_indices = @transform_2, window_bounds = array<i64: 16, 6>}]} {
    %c0 = arith.constant 0 : index
    %c0_0 = arith.constant 0 : index
    %0 = vector.load %arg1[%c0, %c0_0] : memref<16x6xf32, #tpu.memory_space<vmem>>, vector<16x6xf32>
    %c0_1 = arith.constant 0 : index
    %c0_2 = arith.constant 0 : index
    %1 = vector.load %arg2[%c0_1, %c0_2] : memref<6x6xf32, #tpu.memory_space<vmem>>, vector<6x6xf32>
    %cst = arith.constant dense<0.000000e+00> : vector<16x6xf32>
    %2 = tpu.matmul %0, %1, %cst {dimension_numbers = #tpu.dot_dimension_numbers<[1], [0], [0], [1], [0, 0, 1, 1], [], []>} : vector<16x6xf32>, vector<6x6xf32>, vector<16x6xf32> -> vector<16x6xf32>
    %c0_3 = arith.constant 0 : index
    %c0_4 = arith.constant 0 : index
    %3 = vector.load %arg3[%c0_3, %c0_4] : memref<16x6xf32, #tpu.memory_space<vmem>>, vector<16x6xf32>
    tpu.vector_store %arg3[%c0_3, %c0_4], %2 {strides = array<i32>} : memref<16x6xf32, #tpu.memory_space<vmem>>, vector<16x6xf32>,
    return
  }
  func.func @transform_0(%arg0: i32) -> (i32, i32) {
    %c0_i32 = arith.constant 0 : i32
    %c0_i32_0 = arith.constant 0 : i32
    return %arg0, %c0_i32 : i32, i32
  }
  func.func @transform_1(%arg0: i32) -> (i32, i32) {
    %c0_i32 = arith.constant 0 : i32
    %c0_i32_0 = arith.constant 0 : i32
    %c0_i32_1 = arith.constant 0 : i32
    return %c0_i32, %c0_i32_0 : i32, i32
  }
  func.func @transform_2(%arg0: i32) -> (i32, i32) {
    %c0_i32 = arith.constant 0 : i32
    %c0_i32_0 = arith.constant 0 : i32
    return %arg0, %c0_i32 : i32, i32
  }
}

module attributes {stable_mosaic.version = 11 : i64} {
  func.func @_matmul_kernel(%arg0: i32, %arg1: memref<8x6xf32, #tpu.memory_space<vmem>>, %arg2: memref<6x6xf32, #tpu.memory_space<vmem>>, %arg3: memref<8x6xf32, #tpu.memory_space<vmem>>) attributes {dimension_semantics = [#tpu.dimension_semantics<parallel>], iteration_bounds = array<i64: 1>, scalar_prefetch = 0 : i64, scratch_operands = 0 : i64, tpu.core_type = #tpu.core_type<tc>, window_params = [{transform_indices = @transform_0, window_bounds = array<i64: 8, 6>}, {pipeline_mode = #tpu.pipeline_mode<synchronous>, transform_indices = @transform_1, window_bounds = array<i64: 6, 6>}, {transform_indices = @transform_2, window_bounds = array<i64: 8, 6>}]} {
    %c0 = arith.constant 0 : index
    %c0_0 = arith.constant 0 : index
    %0 = vector.load %arg1[%c0, %c0_0] : memref<8x6xf32, #tpu.memory_space<vmem>>, vector<8x6xf32>
    %c0_1 = arith.constant 0 : index
    %c0_2 = arith.constant 0 : index
    %1 = vector.load %arg2[%c0_1, %c0_2] : memref<6x6xf32, #tpu.memory_space<vmem>>, vector<6x6xf32>
    %cst = arith.constant dense<0.000000e+00> : vector<8x6xf32>
    %2 = tpu.matmul %0, %1, %cst {dimension_numbers = #tpu.dot_dimension_numbers<[1], [0], [0], [1], [0, 0, 1, 1], [], []>} : vector<8x6xf32>, vector<6x6xf32>, vector<8x6xf32> -> vector<8x6xf32>
    %c0_3 = arith.constant 0 : index
    %c0_4 = arith.constant 0 : index
    %3 = vector.load %arg3[%c0_3, %c0_4] : memref<8x6xf32, #tpu.memory_space<vmem>>, vector<8x6xf32>
    tpu.vector_store %arg3[%c0_3, %c0_4], %2 {strides = array<i32>} : memref<8x6xf32, #tpu.memory_space<vmem>>, vector<8x6xf32>,
    return
  }
  func.func @transform_0(%arg0: i32) -> (i32, i32) {
    %c0_i32 = arith.constant 0 : i32
    %c0_i32_0 = arith.constant 0 : i32
    return %arg0, %c0_i32 : i32, i32
  }
  func.func @transform_1(%arg0: i32) -> (i32, i32) {
    %c0_i32 = arith.constant 0 : i32
    %c0_i32_0 = arith.constant 0 : i32
    %c0_i32_1 = arith.constant 0 : i32
    return %c0_i32, %c0_i32_0 : i32, i32
  }
  func.func @transform_2(%arg0: i32) -> (i32, i32) {
    %c0_i32 = arith.constant 0 : i32
    %c0_i32_0 = arith.constant 0 : i32
    return %arg0, %c0_i32 : i32, i32
  }
}

module attributes {stable_mosaic.version = 11 : i64} {
  func.func @_matmul_kernel(%arg0: i32, %arg1: memref<4x6xf32, #tpu.memory_space<vmem>>, %arg2: memref<6x6xf32, #tpu.memory_space<vmem>>, %arg3: memref<4x6xf32, #tpu.memory_space<vmem>>) attributes {dimension_semantics = [#tpu.dimension_semantics<parallel>], iteration_bounds = array<i64: 1>, scalar_prefetch = 0 : i64, scratch_operands = 0 : i64, tpu.core_type = #tpu.core_type<tc>, window_params = [{transform_indices = @transform_0, window_bounds = array<i64: 4, 6>}, {pipeline_mode = #tpu.pipeline_mode<synchronous>, transform_indices = @transform_1, window_bounds = array<i64: 6, 6>}, {transform_indices = @transform_2, window_bounds = array<i64: 4, 6>}]} {
    %c0 = arith.constant 0 : index
    %c0_0 = arith.constant 0 : index
    %0 = vector.load %arg1[%c0, %c0_0] : memref<4x6xf32, #tpu.memory_space<vmem>>, vector<4x6xf32>
    %c0_1 = arith.constant 0 : index
    %c0_2 = arith.constant 0 : index
    %1 = vector.load %arg2[%c0_1, %c0_2] : memref<6x6xf32, #tpu.memory_space<vmem>>, vector<6x6xf32>
    %cst = arith.constant dense<0.000000e+00> : vector<4x6xf32>
    %2 = tpu.matmul %0, %1, %cst {dimension_numbers = #tpu.dot_dimension_numbers<[1], [0], [0], [1], [0, 0, 1, 1], [], []>} : vector<4x6xf32>, vector<6x6xf32>, vector<4x6xf32> -> vector<4x6xf32>
    %c0_3 = arith.constant 0 : index
    %c0_4 = arith.constant 0 : index
    %3 = vector.load %arg3[%c0_3, %c0_4] : memref<4x6xf32, #tpu.memory_space<vmem>>, vector<4x6xf32>
    tpu.vector_store %arg3[%c0_3, %c0_4], %2 {strides = array<i32>} : memref<4x6xf32, #tpu.memory_space<vmem>>, vector<4x6xf32>,
    return
  }
  func.func @transform_0(%arg0: i32) -> (i32, i32) {
    %c0_i32 = arith.constant 0 : i32
    %c0_i32_0 = arith.constant 0 : i32
    return %arg0, %c0_i32 : i32, i32
  }
  func.func @transform_1(%arg0: i32) -> (i32, i32) {
    %c0_i32 = arith.constant 0 : i32
    %c0_i32_0 = arith.constant 0 : i32
    %c0_i32_1 = arith.constant 0 : i32
    return %c0_i32, %c0_i32_0 : i32, i32
  }
  func.func @transform_2(%arg0: i32) -> (i32, i32) {
    %c0_i32 = arith.constant 0 : i32
    %c0_i32_0 = arith.constant 0 : i32
    return %arg0, %c0_i32 : i32, i32
  }
}

module attributes {stable_mosaic.version = 11 : i64} {
  func.func @_matmul_kernel(%arg0: i32, %arg1: memref<2x6xf32, #tpu.memory_space<vmem>>, %arg2: memref<6x6xf32, #tpu.memory_space<vmem>>, %arg3: memref<2x6xf32, #tpu.memory_space<vmem>>) attributes {dimension_semantics = [#tpu.dimension_semantics<parallel>], iteration_bounds = array<i64: 1>, scalar_prefetch = 0 : i64, scratch_operands = 0 : i64, tpu.core_type = #tpu.core_type<tc>, window_params = [{transform_indices = @transform_0, window_bounds = array<i64: 2, 6>}, {pipeline_mode = #tpu.pipeline_mode<synchronous>, transform_indices = @transform_1, window_bounds = array<i64: 6, 6>}, {transform_indices = @transform_2, window_bounds = array<i64: 2, 6>}]} {
    %c0 = arith.constant 0 : index
    %c0_0 = arith.constant 0 : index
    %0 = vector.load %arg1[%c0, %c0_0] : memref<2x6xf32, #tpu.memory_space<vmem>>, vector<2x6xf32>
    %c0_1 = arith.constant 0 : index
    %c0_2 = arith.constant 0 : index
    %1 = vector.load %arg2[%c0_1, %c0_2] : memref<6x6xf32, #tpu.memory_space<vmem>>, vector<6x6xf32>
    %cst = arith.constant dense<0.000000e+00> : vector<2x6xf32>
    %2 = tpu.matmul %0, %1, %cst {dimension_numbers = #tpu.dot_dimension_numbers<[1], [0], [0], [1], [0, 0, 1, 1], [], []>} : vector<2x6xf32>, vector<6x6xf32>, vector<2x6xf32> -> vector<2x6xf32>
    %c0_3 = arith.constant 0 : index
    %c0_4 = arith.constant 0 : index
    %3 = vector.load %arg3[%c0_3, %c0_4] : memref<2x6xf32, #tpu.memory_space<vmem>>, vector<2x6xf32>
    tpu.vector_store %arg3[%c0_3, %c0_4], %2 {strides = array<i32>} : memref<2x6xf32, #tpu.memory_space<vmem>>, vector<2x6xf32>,
    return
  }
  func.func @transform_0(%arg0: i32) -> (i32, i32) {
    %c0_i32 = arith.constant 0 : i32
    %c0_i32_0 = arith.constant 0 : i32
    return %arg0, %c0_i32 : i32, i32
  }
  func.func @transform_1(%arg0: i32) -> (i32, i32) {
    %c0_i32 = arith.constant 0 : i32
    %c0_i32_0 = arith.constant 0 : i32
    %c0_i32_1 = arith.constant 0 : i32
    return %c0_i32, %c0_i32_0 : i32, i32
  }
  func.func @transform_2(%arg0: i32) -> (i32, i32) {
    %c0_i32 = arith.constant 0 : i32
    %c0_i32_0 = arith.constant 0 : i32
    return %arg0, %c0_i32 : i32, i32
  }
}

module attributes {stable_mosaic.version = 11 : i64} {
  func.func @_matmul_bias_kernel(%arg0: i32, %arg1: memref<2x3xf32, #tpu.memory_space<vmem>>, %arg2: memref<3x3xf32, #tpu.memory_space<vmem>>, %arg3: memref<1x3xf32, #tpu.memory_space<vmem>>, %arg4: memref<2x3xf32, #tpu.memory_space<vmem>>) attributes {dimension_semantics = [#tpu.dimension_semantics<parallel>], iteration_bounds = array<i64: 1>, scalar_prefetch = 0 : i64, scratch_operands = 0 : i64, tpu.core_type = #tpu.core_type<tc>, window_params = [{transform_indices = @transform_0, window_bounds = array<i64: 2, 3>}, {pipeline_mode = #tpu.pipeline_mode<synchronous>, transform_indices = @transform_1, window_bounds = array<i64: 3, 3>}, {pipeline_mode = #tpu.pipeline_mode<synchronous>, transform_indices = @transform_2, window_bounds = array<i64: 1, 3>}, {transform_indices = @transform_3, window_bounds = array<i64: 2, 3>}]} {
    %c0 = arith.constant 0 : index
    %c0_0 = arith.constant 0 : index
    %0 = vector.load %arg1[%c0, %c0_0] : memref<2x3xf32, #tpu.memory_space<vmem>>, vector<2x3xf32>
    %c0_1 = arith.constant 0 : index
    %c0_2 = arith.constant 0 : index
    %1 = vector.load %arg2[%c0_1, %c0_2] : memref<3x3xf32, #tpu.memory_space<vmem>>, vector<3x3xf32>
    %cst = arith.constant dense<0.000000e+00> : vector<2x3xf32>
    %2 = tpu.matmul %0, %1, %cst {dimension_numbers = #tpu.dot_dimension_numbers<[1], [0], [0], [1], [0, 0, 1, 1], [], []>} : vector<2x3xf32>, vector<3x3xf32>, vector<2x3xf32> -> vector<2x3xf32>
    %c0_3 = arith.constant 0 : index
    %c0_4 = arith.constant 0 : index
    %3 = vector.load %arg3[%c0_3, %c0_4] : memref<1x3xf32, #tpu.memory_space<vmem>>, vector<1x3xf32>
    %4 = vector.broadcast %3 : vector<1x3xf32> to vector<2x3xf32>
    %5 = arith.addf %2, %4 : vector<2x3xf32>
    %c0_5 = arith.constant 0 : index
    %c0_6 = arith.constant 0 : index
    %6 = vector.load %arg4[%c0_5, %c0_6] : memref<2x3xf32, #tpu.memory_space<vmem>>, vector<2x3xf32>
    tpu.vector_store %arg4[%c0_5, %c0_6], %5 {strides = array<i32>} : memref<2x3xf32, #tpu.memory_space<vmem>>, vector<2x3xf32>,
    return
  }
  func.func @transform_0(%arg0: i32) -> (i32, i32) {
    %c0_i32 = arith.constant 0 : i32
    %c0_i32_0 = arith.constant 0 : i32
    return %arg0, %c0_i32 : i32, i32
  }
  func.func @transform_1(%arg0: i32) -> (i32, i32) {
    %c0_i32 = arith.constant 0 : i32
    %c0_i32_0 = arith.constant 0 : i32
    %c0_i32_1 = arith.constant 0 : i32
    return %c0_i32, %c0_i32_0 : i32, i32
  }
  func.func @transform_2(%arg0: i32) -> (i32, i32) {
    %c0_i32 = arith.constant 0 : i32
    %c0_i32_0 = arith.constant 0 : i32
    %c0_i32_1 = arith.constant 0 : i32
    return %c0_i32, %c0_i32_0 : i32, i32
  }
  func.func @transform_3(%arg0: i32) -> (i32, i32) {
    %c0_i32 = arith.constant 0 : i32
    %c0_i32_0 = arith.constant 0 : i32
    return %arg0, %c0_i32 : i32, i32
  }
}

module attributes {stable_mosaic.version = 11 : i64} {
  func.func @_spectral_fused_kernel(%arg0: memref<1x2x12xf32, #tpu.memory_space<vmem>>, %arg1: memref<1x12x18xf32, #tpu.memory_space<vmem>>, %arg2: memref<1x2x18xf32, #tpu.memory_space<vmem>>) attributes {dimension_semantics = [], scalar_prefetch = 0 : i64, scratch_operands = 0 : i64, tpu.core_type = #tpu.core_type<tc>} {
    %c0 = arith.constant 0 : index
    %c0_0 = arith.constant 0 : index
    %c0_1 = arith.constant 0 : index
    %0 = vector.load %arg0[%c0, %c0_0, %c0_1] : memref<1x2x12xf32, #tpu.memory_space<vmem>>, vector<1x2x12xf32>
    %c0_2 = arith.constant 0 : index
    %c0_3 = arith.constant 0 : index
    %c0_4 = arith.constant 0 : index
    %1 = vector.load %arg1[%c0_2, %c0_3, %c0_4] : memref<1x12x18xf32, #tpu.memory_space<vmem>>, vector<1x12x18xf32>
    %cst = arith.constant dense<0.000000e+00> : vector<1x2x18xf32>
    %2 = tpu.matmul %0, %1, %cst {dimension_numbers = #tpu.dot_dimension_numbers<[2], [1], [1], [2], [0, 0, 0, 1, 1, 2], [0], [0]>} : vector<1x2x12xf32>, vector<1x12x18xf32>, vector<1x2x18xf32> -> vector<1x2x18xf32>
    %c0_5 = arith.constant 0 : index
    %c0_6 = arith.constant 0 : index
    %c0_7 = arith.constant 0 : index
    %3 = vector.load %arg2[%c0_5, %c0_6, %c0_7] : memref<1x2x18xf32, #tpu.memory_space<vmem>>, vector<1x2x18xf32>
    tpu.vector_store %arg2[%c0_5, %c0_6, %c0_7], %2 {strides = array<i32>} : memref<1x2x18xf32, #tpu.memory_space<vmem>>, vector<1x2x18xf32>,
    return
  }
}

module attributes {stable_mosaic.version = 11 : i64} {
  func.func @_spectral_fused_kernel(%arg0: memref<5x2x12xf32, #tpu.memory_space<vmem>>, %arg1: memref<5x12x18xf32, #tpu.memory_space<vmem>>, %arg2: memref<5x2x18xf32, #tpu.memory_space<vmem>>) attributes {dimension_semantics = [], scalar_prefetch = 0 : i64, scratch_operands = 0 : i64, tpu.core_type = #tpu.core_type<tc>} {
    %c0 = arith.constant 0 : index
    %c0_0 = arith.constant 0 : index
    %c0_1 = arith.constant 0 : index
    %0 = vector.load %arg0[%c0, %c0_0, %c0_1] : memref<5x2x12xf32, #tpu.memory_space<vmem>>, vector<5x2x12xf32>
    %c0_2 = arith.constant 0 : index
    %c0_3 = arith.constant 0 : index
    %c0_4 = arith.constant 0 : index
    %1 = vector.load %arg1[%c0_2, %c0_3, %c0_4] : memref<5x12x18xf32, #tpu.memory_space<vmem>>, vector<5x12x18xf32>
    %cst = arith.constant dense<0.000000e+00> : vector<5x2x18xf32>
    %2 = tpu.matmul %0, %1, %cst {dimension_numbers = #tpu.dot_dimension_numbers<[2], [1], [1], [2], [0, 0, 0, 1, 1, 2], [0], [0]>} : vector<5x2x12xf32>, vector<5x12x18xf32>, vector<5x2x18xf32> -> vector<5x2x18xf32>
    %c0_5 = arith.constant 0 : index
    %c0_6 = arith.constant 0 : index
    %c0_7 = arith.constant 0 : index
    %3 = vector.load %arg2[%c0_5, %c0_6, %c0_7] : memref<5x2x18xf32, #tpu.memory_space<vmem>>, vector<5x2x18xf32>
    tpu.vector_store %arg2[%c0_5, %c0_6, %c0_7], %2 {strides = array<i32>} : memref<5x2x18xf32, #tpu.memory_space<vmem>>, vector<5x2x18xf32>,
    return
  }
}

module attributes {stable_mosaic.version = 11 : i64} {
  func.func @_spectral_fused_kernel(%arg0: memref<2x2x12xf32, #tpu.memory_space<vmem>>, %arg1: memref<2x12x18xf32, #tpu.memory_space<vmem>>, %arg2: memref<2x2x18xf32, #tpu.memory_space<vmem>>) attributes {dimension_semantics = [], scalar_prefetch = 0 : i64, scratch_operands = 0 : i64, tpu.core_type = #tpu.core_type<tc>} {
    %c0 = arith.constant 0 : index
    %c0_0 = arith.constant 0 : index
    %c0_1 = arith.constant 0 : index
    %0 = vector.load %arg0[%c0, %c0_0, %c0_1] : memref<2x2x12xf32, #tpu.memory_space<vmem>>, vector<2x2x12xf32>
    %c0_2 = arith.constant 0 : index
    %c0_3 = arith.constant 0 : index
    %c0_4 = arith.constant 0 : index
    %1 = vector.load %arg1[%c0_2, %c0_3, %c0_4] : memref<2x12x18xf32, #tpu.memory_space<vmem>>, vector<2x12x18xf32>
    %cst = arith.constant dense<0.000000e+00> : vector<2x2x18xf32>
    %2 = tpu.matmul %0, %1, %cst {dimension_numbers = #tpu.dot_dimension_numbers<[2], [1], [1], [2], [0, 0, 0, 1, 1, 2], [0], [0]>} : vector<2x2x12xf32>, vector<2x12x18xf32>, vector<2x2x18xf32> -> vector<2x2x18xf32>
    %c0_5 = arith.constant 0 : index
    %c0_6 = arith.constant 0 : index
    %c0_7 = arith.constant 0 : index
    %3 = vector.load %arg2[%c0_5, %c0_6, %c0_7] : memref<2x2x18xf32, #tpu.memory_space<vmem>>, vector<2x2x18xf32>
    tpu.vector_store %arg2[%c0_5, %c0_6, %c0_7], %2 {strides = array<i32>} : memref<2x2x18xf32, #tpu.memory_space<vmem>>, vector<2x2x18xf32>,
    return
  }
}

module attributes {stable_mosaic.version = 11 : i64} {
  func.func @_spectral_fused_kernel(%arg0: memref<3x2x12xf32, #tpu.memory_space<vmem>>, %arg1: memref<3x12x18xf32, #tpu.memory_space<vmem>>, %arg2: memref<3x2x18xf32, #tpu.memory_space<vmem>>) attributes {dimension_semantics = [], scalar_prefetch = 0 : i64, scratch_operands = 0 : i64, tpu.core_type = #tpu.core_type<tc>} {
    %c0 = arith.constant 0 : index
    %c0_0 = arith.constant 0 : index
    %c0_1 = arith.constant 0 : index
    %0 = vector.load %arg0[%c0, %c0_0, %c0_1] : memref<3x2x12xf32, #tpu.memory_space<vmem>>, vector<3x2x12xf32>
    %c0_2 = arith.constant 0 : index
    %c0_3 = arith.constant 0 : index
    %c0_4 = arith.constant 0 : index
    %1 = vector.load %arg1[%c0_2, %c0_3, %c0_4] : memref<3x12x18xf32, #tpu.memory_space<vmem>>, vector<3x12x18xf32>
    %cst = arith.constant dense<0.000000e+00> : vector<3x2x18xf32>
    %2 = tpu.matmul %0, %1, %cst {dimension_numbers = #tpu.dot_dimension_numbers<[2], [1], [1], [2], [0, 0, 0, 1, 1, 2], [0], [0]>} : vector<3x2x12xf32>, vector<3x12x18xf32>, vector<3x2x18xf32> -> vector<3x2x18xf32>
    %c0_5 = arith.constant 0 : index
    %c0_6 = arith.constant 0 : index
    %c0_7 = arith.constant 0 : index
    %3 = vector.load %arg2[%c0_5, %c0_6, %c0_7] : memref<3x2x18xf32, #tpu.memory_space<vmem>>, vector<3x2x18xf32>
    tpu.vector_store %arg2[%c0_5, %c0_6, %c0_7], %2 {strides = array<i32>} : memref<3x2x18xf32, #tpu.memory_space<vmem>>, vector<3x2x18xf32>,
    return
  }
}

</mosaic_0001>

<bundles_post_ra>
// kernel: mwt_cz1d_forward.13
= control target key start
LH: loop header
LB: loop body
LE: loop exit
PB: predicated region body
PF: predicated region fallthrough
CT: control target
= control target key end

     0   :  { %vm21_vm0 = vcmask 1045504   ;;  %vm14_vm1 = vcmask 48128   ;;  %s147_s1 = inlined_call_operand.vmem [shape: f32[6,6], index: 1, kind: input, shape index: {}]   ;;  %s148_s0 = inlined_call_operand.vmem [shape: f32[16,6], index: 0, kind: input, shape index: {}]   ;;  %s149_s2 = inlined_call_operand.vmem [shape: f32[16,6], index: 2, kind: output, shape index: {}]  }
   0x1   :  { %v13_v0 = vld [vmem:[%s147_s1] sm:$0x3f]  ;;  %v12_v2 = vld [vmem:[%s148_s0 + $0x8] sm:$0xff] }
   0x2   :  { %v11_v1 = vld [vmem:[%s148_s0] sm:$0xff]  ;;  %112 = vmatprep.subr.msk.mxu0 %vm21_vm0, %v13_v0 }
   0x3   :  { %114 = vmatprep.mubr.msk.f32.mxu0 %vm14_vm1, %v11_v1  ;;  %113 = vmatpush3.msk.msra.mxu0 %vm21_vm0, %v13_v0 }
   0x4   :  { %115 = vmatmul.mubr.msk.f32.vlgmr.msra.gmra.mxu0 %vm14_vm1, %v12_v2 }
  0xc4   :  { %v116_v3 = vpop.f32.mrf.mxu0 }
  0xc5   :  { %101 = vst.msk [vmem:[%s149_s2 + $0x8] sm:$0xff] %vm14_vm1, %v116_v3 }
  0xc6   :  { %v91_v4 = vpop.f32.mrf.mxu0 }
  0xc7   :  { %100 = vst.msk [vmem:[%s149_s2] sm:$0xff] %vm14_vm1, %v91_v4 }

// kernel: mwt_cz1d_forward.14
= control target key start
LH: loop header
LB: loop body
LE: loop exit
PB: predicated region body
PF: predicated region fallthrough
CT: control target
= control target key end

     0   :  { %vm17_vm0 = vcmask 1045504   ;;  %vm13_vm1 = vcmask 48128   ;;  %v107_v0 = vmov 0.0   ;;  %vm108_vm2 = vmmov 0   ;;  %s133_s1 = inlined_call_operand.vmem [shape: f32[6,6], index: 1, kind: input, shape index: {}]   ;;  %s134_s0 = inlined_call_operand.vmem [shape: f32[8,6], index: 0, kind: input, shape index: {}]   ;;  %s135_s2 = inlined_call_operand.vmem [shape: f32[8,6], index: 2, kind: output, shape index: {}]  }
   0x1   :  { %100 = vmatprep.subr.mxu0 %v107_v0  ;;  %v12_v1 = vld [vmem:[%s133_s1] sm:$0x3f]  ;;  %102 = vmatprep.mubr.msk.f32.mxu0 %vm108_vm2, %v107_v0 }
   0x2   :  { %v11_v2 = vld [vmem:[%s134_s0] sm:$0xff]  ;;  %101 = vmatpush3.msk.msra.mxu0 %vm17_vm0, %v12_v1 }
   0x3   :  { %103 = vmatmul.mubr.msk.f32.vlgmr.msra.gmra.mxu0 %vm13_vm1, %v11_v2 }
  0xc3   :  { %v87_v3 = vpop.f32.mrf.mxu0 }
  0xc4   :  { %91 = vst.msk [vmem:[%s135_s2] sm:$0xff] %vm13_vm1, %v87_v3 }
  0xc5   :  { %v104_v4 = vpop.f32.mrf.mxu0 }

// kernel: mwt_cz1d_forward.15
= control target key start
LH: loop header
LB: loop body
LE: loop exit
PB: predicated region body
PF: predicated region fallthrough
CT: control target
= control target key end

     0   :  { %vm17_vm0 = vcmask 1045504   ;;  %vm13_vm1 = vcmask 48128   ;;  %v108_v0 = vmov 0.0   ;;  %vm109_vm2 = vmmov 0   ;;  %s134_s1 = inlined_call_operand.vmem [shape: f32[6,6], index: 1, kind: input, shape index: {}]   ;;  %s135_s0 = inlined_call_operand.vmem [shape: f32[4,6], index: 0, kind: input, shape index: {}]   ;;  %s136_s2 = inlined_call_operand.vmem [shape: f32[4,6], index: 2, kind: output, shape index: {}]  }
   0x1   :  { %101 = vmatprep.subr.mxu0 %v108_v0  ;;  %v12_v1 = vld [vmem:[%s134_s1] sm:$0x3f]  ;;  %103 = vmatprep.mubr.msk.f32.mxu0 %vm109_vm2, %v108_v0  ;;  %vm91_vm3 = vcmask 44032  }
   0x2   :  { %v11_v2 = vld [vmem:[%s135_s0] sm:$0xf]  ;;  %102 = vmatpush3.msk.msra.mxu0 %vm17_vm0, %v12_v1 }
   0x3   :  { %104 = vmatmul.mubr.msk.f32.vlgmr.msra.gmra.mxu0 %vm13_vm1, %v11_v2 }
  0xc3   :  { %v87_v3 = vpop.f32.mrf.mxu0 }
  0xc4   :  { %92 = vst.msk [vmem:[%s136_s2] sm:$0xf] %vm91_vm3, %v87_v3 }
  0xc5   :  { %v105_v4 = vpop.f32.mrf.mxu0 }

// kernel: mwt_cz1d_forward.16
= control target key start
LH: loop header
LB: loop body
LE: loop exit
PB: predicated region body
PF: predicated region fallthrough
CT: control target
= control target key end

     0   :  { %vm17_vm0 = vcmask 1045504   ;;  %vm13_vm1 = vcmask 48128   ;;  %v108_v0 = vmov 0.0   ;;  %vm109_vm2 = vmmov 0   ;;  %s134_s1 = inlined_call_operand.vmem [shape: f32[6,6], index: 1, kind: input, shape index: {}]   ;;  %s135_s0 = inlined_call_operand.vmem [shape: f32[2,6], index: 0, kind: input, shape index: {}]   ;;  %s136_s2 = inlined_call_operand.vmem [shape: f32[2,6], index: 2, kind: output, shape index: {}]  }
   0x1   :  { %101 = vmatprep.subr.mxu0 %v108_v0  ;;  %v12_v1 = vld [vmem:[%s134_s1] sm:$0x3f]  ;;  %103 = vmatprep.mubr.msk.f32.mxu0 %vm109_vm2, %v108_v0  ;;  %vm91_vm3 = vcmask 41984  }
   0x2   :  { %v11_v2 = vld [vmem:[%s135_s0] sm:$0x3]  ;;  %102 = vmatpush3.msk.msra.mxu0 %vm17_vm0, %v12_v1 }
   0x3   :  { %104 = vmatmul.mubr.msk.f32.vlgmr.msra.gmra.mxu0 %vm13_vm1, %v11_v2 }
  0xc3   :  { %v87_v3 = vpop.f32.mrf.mxu0 }
  0xc4   :  { %92 = vst.msk [vmem:[%s136_s2] sm:$0x3] %vm91_vm3, %v87_v3 }
  0xc5   :  { %v105_v4 = vpop.f32.mrf.mxu0 }

// kernel: mwt_cz1d_forward.17
= control target key start
LH: loop header
LB: loop body
LE: loop exit
PB: predicated region body
PF: predicated region fallthrough
CT: control target
= control target key end

     0   :  { %vm27_vm0 = vcmask 1042432   ;;  %vm23_vm1 = vcmask 23552   ;;  %v119_v0 = vmov 0.0   ;;  %vm120_vm2 = vmmov 0   ;;  %s153_s1 = inlined_call_operand.vmem [shape: f32[3,3], index: 1, kind: input, shape index: {}]   ;;  %s154_s0 = inlined_call_operand.vmem [shape: f32[2,3], index: 0, kind: input, shape index: {}]   ;;  %s155_s2 = inlined_call_operand.vmem [shape: f32[1,3], index: 2, kind: input, shape index: {}]   ;;  %s156_s3 = inlined_call_operand.vmem [shape: f32[2,3], index: 3, kind: output, shape index: {}]  }
   0x1   :  { %112 = vmatprep.subr.mxu0 %v119_v0  ;;  %v15_v1 = vld [vmem:[%s153_s1] sm:$0x7]  ;;  %114 = vmatprep.mubr.msk.f32.mxu0 %vm120_vm2, %v119_v0  ;;  %vm101_vm3 = vcmask 17408  }
   0x2   :  { %v14_v2 = vld [vmem:[%s154_s0] sm:$0x3]  ;;  %113 = vmatpush3.msk.msra.mxu0 %vm27_vm0, %v15_v1 }
   0x3   :  { %115 = vmatmul.mubr.msk.f32.vlgmr.msra.gmra.mxu0 %vm23_vm1, %v14_v2  ;;  %v107_v3 = vld [vmem:[%s155_s2] ss:$0 sm:$0xff] }
  0xc3   :  { %v97_v4 = vpop.f32.mrf.mxu0 }
  0xc4   :  { %v98_v5 = vadd.f32 %v107_v3, %v97_v4 }
  0xc5   :  { %v116_v6 = vpop.f32.mrf.mxu0 }
  0xc6   :  { %102 = vst.msk [vmem:[%s156_s3] sm:$0x3] %vm101_vm3, %v98_v5 }

// kernel: mwt_cz1d_forward.18
= control target key start
LH: loop header
LB: loop body
LE: loop exit
PB: predicated region body
PF: predicated region fallthrough
CT: control target
= control target key end

     0   :  { %vm18_vm0 = vcmask 1043456   ;;  %v112_v0 = vmov 0.0   ;;  %vm113_vm1 = vmmov 0   ;;  %vm14_vm2 = vcmask 97280   ;;  %s141_s1 = inlined_call_operand.vmem [shape: f32[1,12,18], index: 1, kind: input, shape index: {}]   ;;  %s142_s0 = inlined_call_operand.vmem [shape: f32[1,2,12], index: 0, kind: input, shape index: {}]   ;;  %s143_s2 = inlined_call_operand.vmem [shape: f32[1,2,18], index: 2, kind: output, shape index: {}]  }
   0x1   :  { %103 = vmatprep.subr.mxu0 %v112_v0  ;;  %v13_v1 = vld [vmem:[%s141_s1 + $0x8] sm:$0xf]  ;;  %v12_v2 = vld [vmem:[%s141_s1] sm:$0xff]  ;;  %107 = vmatprep.mubr.msk.f32.mxu0 %vm113_vm1, %v112_v0  ;;  %vm92_vm3 = vcmask 140288  }
   0x2   :  { %104 = vmatpush3.msk.msra.mxu0 %vm18_vm0, %v13_v1  ;;  %v11_v3 = vld [vmem:[%s142_s0] sm:$0x3] }
   0x3   :  { %105 = vmatprep.subr.mxu0 %v112_v0 }
   0x4   :  { %106 = vmatpush3.msra.mxu0 %v12_v2 }
   0x5   :  { %108 = vmatmul.mubr.msk.f32.vlgmr.msra.gmra.mxu0 %vm14_vm2, %v11_v3 }
  0xc5   :  { %v88_v4 = vpop.f32.mrf.mxu0 }
  0xc6   :  { %93 = vst.msk [vmem:[%s143_s2] sm:$0x3] %vm92_vm3, %v88_v4 }
  0xc7   :  { %v109_v5 = vpop.f32.mrf.mxu0 }

// kernel: reverse.6
= control target key start
LH: loop header
LB: loop body
LE: loop exit
PB: predicated region body
PF: predicated region fallthrough
CT: control target
= control target key end

     0   :  { %s44_s0 = inlined_call_operand.vmem [shape: f32[2,3,3], index: 0, kind: input, shape index: {}]   ;;  %s45_s1 = inlined_call_operand.vmem [shape: f32[2,3,3], index: 1, kind: output, shape index: {}]  }
   0x1   :  { %v12_v0 = vld [vmem:[%s44_s0 + $0x4] sm:$0x3]  ;;  %v13_v1 = vld [vmem:[%s44_s0 + $0x2] sm:$0x3]  ;;  %v9_v2 = vld [vmem:[%s44_s0] sm:$0x3] }
   0x2   :  { %4 = vst [vmem:[%s45_s1] sm:$0x3] %v12_v0  ;;  %14 = vst [vmem:[%s45_s1 + $0x2] sm:$0x3] %v13_v1 }
   0x3   :  { %15 = vst [vmem:[%s45_s1 + $0x4] sm:$0x3] %v9_v2 }

// kernel: mwt_cz1d_forward.24
= control target key start
LH: loop header
LB: loop body
LE: loop exit
PB: predicated region body
PF: predicated region fallthrough
CT: control target
= control target key end

     0   :  { %vm30_vm0 = vcmask 1043456   ;;  %v480_v0 = vmov 0.0   ;;  %vm481_vm1 = vmmov 0   ;;  %vm26_vm2 = vcmask 97280   ;;  %s572_s1 = inlined_call_operand.vmem [shape: f32[5,12,18], index: 1, kind: input, shape index: {}]   ;;  %s573_s0 = inlined_call_operand.vmem [shape: f32[5,2,12], index: 0, kind: input, shape index: {}]   ;;  %s574_s2 = inlined_call_operand.vmem [shape: f32[5,2,18], index: 2, kind: output, shape index: {}]  }
   0x1   :  { %443 = vmatprep.subr.mxu0 %v480_v0  ;;  %v17_v1 = vld [vmem:[%s572_s1 + $0x8] sm:$0xf]  ;;  %v16_v2 = vld [vmem:[%s572_s1] sm:$0xff]  ;;  %447 = vmatprep.mubr.msk.f32.mxu0 %vm481_vm1, %v480_v0  ;;  %v19_v4 = vld [vmem:[%s572_s1 + $0x18] sm:$0xf]  ;;  %vm408_vm3 = vcmask 140288  }
   0x2   :  { %444 = vmatpush3.msk.msra.mxu0 %vm30_vm0, %v17_v1  ;;  %450 = vmatprep.subr.mxu1 %v480_v0  ;;  %v11_v3 = vld [vmem:[%s573_s0] sm:$0x3]  ;;  %v21_v5 = vld [vmem:[%s572_s1 + $0x28] sm:$0xf]  ;;  %v18_v6 = vld [vmem:[%s572_s1 + $0x10] sm:$0xff] }
   0x3   :  { %445 = vmatprep.subr.mxu0 %v480_v0  ;;  %451 = vmatpush3.msk.msra.mxu1 %vm30_vm0, %v19_v4  ;;  %v12_v7 = vld [vmem:[%s573_s0 + $0x2] sm:$0x3]  ;;  %v13_v9 = vld [vmem:[%s573_s0 + $0x4] sm:$0x3]  ;;  %v23_v10 = vld [vmem:[%s572_s1 + $0x38] sm:$0xf] }
   0x4   :  { %446 = vmatpush3.msra.mxu0 %v16_v2  ;;  %452 = vmatprep.subr.mxu1 %v480_v0  ;;  %v20_v8 = vld [vmem:[%s572_s1 + $0x20] sm:$0xff]  ;;  %v25_v11 = vld [vmem:[%s572_s1 + $0x48] sm:$0xf]  ;;  %v22_v12 = vld [vmem:[%s572_s1 + $0x30] sm:$0xff] }
   0x5   :  { %448 = vmatmul.mubr.msk.f32.vlgmr.msra.gmra.mxu0 %vm26_vm2, %v11_v3  ;;  %457 = vmatprep.subr.mxu0 %v480_v0  ;;  %v14_v13 = vld [vmem:[%s573_s0 + $0x6] sm:$0x3]  ;;  %v15_v15 = vld [vmem:[%s573_s0 + $0x8] sm:$0x3] }
   0x6   :  { %458 = vmatpush3.msk.msra.mxu0 %vm30_vm0, %v21_v5  ;;  %453 = vmatpush3.msra.mxu1 %v18_v6  ;;  %v24_v14 = vld [vmem:[%s572_s1 + $0x40] sm:$0xff] }
   0x7   :  { %454 = vmatprep.mubr.msk.f32.mxu1 %vm481_vm1, %v480_v0  ;;  %459 = vmatprep.subr.mxu0 %v480_v0 }
   0x8   :  { %455 = vmatmul.mubr.msk.f32.vlgmr.msra.gmra.mxu1 %vm26_vm2, %v12_v7  ;;  %460 = vmatpush3.msra.mxu0 %v20_v8 }
   0x9   :  { %461 = vmatprep.mubr.msk.f32.mxu0 %vm481_vm1, %v480_v0  ;;  %464 = vmatprep.subr.mxu1 %v480_v0 }
   0xa   :  { %462 = vmatmul.mubr.msk.f32.vlgmr.msra.gmra.mxu0 %vm26_vm2, %v13_v9  ;;  %465 = vmatpush3.msk.msra.mxu1 %vm30_vm0, %v23_v10 }
   0xb   :  { %471 = vmatprep.subr.mxu0 %v480_v0  ;;  %466 = vmatprep.subr.mxu1 %v480_v0 }
   0xc   :  { %472 = vmatpush3.msk.msra.mxu0 %vm30_vm0, %v25_v11  ;;  %467 = vmatpush3.msra.mxu1 %v22_v12 }
   0xd   :  { %468 = vmatprep.mubr.msk.f32.mxu1 %vm481_vm1, %v480_v0  ;;  %473 = vmatprep.subr.mxu0 %v480_v0 }
   0xe   :  { %469 = vmatmul.mubr.msk.f32.vlgmr.msra.gmra.mxu1 %vm26_vm2, %v14_v13  ;;  %474 = vmatpush3.msra.mxu0 %v24_v14 }
   0xf   :  { %475 = vmatprep.mubr.msk.f32.mxu0 %vm481_vm1, %v480_v0 }
  0x10   :  { %476 = vmatmul.mubr.msk.f32.vlgmr.msra.gmra.mxu0 %vm26_vm2, %v15_v15 }
  0xc5   :  { %v100_v16 = vpop.f32.mrf.mxu0 }
  0xc6   :  { %409 = vst.msk [vmem:[%s574_s2] sm:$0x3] %vm408_vm3, %v100_v16 }
  0xc7   :  { %v449_v17 = vpop.f32.mrf.mxu0 }
  0xc8   :  { %v176_v18 = vpop.f32.mrf.mxu1 }
  0xc9   :  { %410 = vst.msk [vmem:[%s574_s2 + $0x2] sm:$0x3] %vm408_vm3, %v176_v18 }
  0xca   :  { %v252_v19 = vpop.f32.mrf.mxu0  ;;  %v456_v20 = vpop.f32.mrf.mxu1 }
  0xcb   :  { %411 = vst.msk [vmem:[%s574_s2 + $0x4] sm:$0x3] %vm408_vm3, %v252_v19 }
  0xcc   :  { %v463_v21 = vpop.f32.mrf.mxu0 }
  0xce   :  { %v328_v22 = vpop.f32.mrf.mxu1 }
  0xcf   :  { %412 = vst.msk [vmem:[%s574_s2 + $0x6] sm:$0x3] %vm408_vm3, %v328_v22 }
  0xd0   :  { %v404_v23 = vpop.f32.mrf.mxu0  ;;  %v470_v24 = vpop.f32.mrf.mxu1 }
  0xd1   :  { %413 = vst.msk [vmem:[%s574_s2 + $0x8] sm:$0x3] %vm408_vm3, %v404_v23 }
  0xd2   :  { %v477_v25 = vpop.f32.mrf.mxu0 }

// kernel: mwt_cz1d_forward.20
= control target key start
LH: loop header
LB: loop body
LE: loop exit
PB: predicated region body
PF: predicated region fallthrough
CT: control target
= control target key end

     0   :  { %vm21_vm0 = vcmask 1043456   ;;  %v204_v0 = vmov 0.0   ;;  %vm17_vm1 = vcmask 97280   ;;  %vm205_vm2 = vmmov 0   ;;  %s245_s1 = inlined_call_operand.vmem [shape: f32[2,12,18], index: 1, kind: input, shape index: {}]   ;;  %s246_s0 = inlined_call_operand.vmem [shape: f32[2,2,12], index: 0, kind: input, shape index: {}]   ;;  %s247_s2 = inlined_call_operand.vmem [shape: f32[2,2,18], index: 2, kind: output, shape index: {}]  }
   0x1   :  { %188 = vmatprep.subr.mxu0 %v204_v0  ;;  %195 = vmatprep.subr.mxu1 %v204_v0  ;;  %v14_v1 = vld [vmem:[%s245_s1 + $0x8] sm:$0xf]  ;;  %v16_v2 = vld [vmem:[%s245_s1 + $0x18] sm:$0xf]  ;;  %v13_v3 = vld [vmem:[%s245_s1] sm:$0xff]  ;;  %vm171_vm3 = vcmask 140288  }
   0x2   :  { %189 = vmatpush3.msk.msra.mxu0 %vm21_vm0, %v14_v1  ;;  %196 = vmatpush3.msk.msra.mxu1 %vm21_vm0, %v16_v2  ;;  %v15_v4 = vld [vmem:[%s245_s1 + $0x10] sm:$0xff]  ;;  %v11_v5 = vld [vmem:[%s246_s0] sm:$0x3]  ;;  %v12_v6 = vld [vmem:[%s246_s0 + $0x2] sm:$0x3] }
   0x3   :  { %190 = vmatprep.subr.mxu0 %v204_v0  ;;  %197 = vmatprep.subr.mxu1 %v204_v0 }
   0x4   :  { %191 = vmatpush3.msra.mxu0 %v13_v3  ;;  %192 = vmatprep.mubr.msk.f32.mxu0 %vm205_vm2, %v204_v0 }
   0x5   :  { %198 = vmatpush3.msra.mxu1 %v15_v4  ;;  %199 = vmatprep.mubr.msk.f32.mxu1 %vm205_vm2, %v204_v0 }
   0x6   :  { %193 = vmatmul.mubr.msk.f32.vlgmr.msra.gmra.mxu0 %vm17_vm1, %v11_v5  ;;  %200 = vmatmul.mubr.msk.f32.vlgmr.msra.gmra.mxu1 %vm17_vm1, %v12_v6 }
  0xc6   :  { %v91_v7 = vpop.f32.mrf.mxu0  ;;  %v167_v8 = vpop.f32.mrf.mxu1 }
  0xc7   :  { %172 = vst.msk [vmem:[%s247_s2] sm:$0x3] %vm171_vm3, %v91_v7  ;;  %173 = vst.msk [vmem:[%s247_s2 + $0x2] sm:$0x3] %vm171_vm3, %v167_v8 }
  0xc8   :  { %v194_v9 = vpop.f32.mrf.mxu0  ;;  %v201_v10 = vpop.f32.mrf.mxu1 }

// kernel: mwt_cz1d_forward.22
= control target key start
LH: loop header
LB: loop body
LE: loop exit
PB: predicated region body
PF: predicated region fallthrough
CT: control target
= control target key end

     0   :  { %vm24_vm0 = vcmask 1043456   ;;  %v296_v0 = vmov 0.0   ;;  %vm297_vm1 = vmmov 0   ;;  %vm20_vm2 = vcmask 97280   ;;  %s358_s1 = inlined_call_operand.vmem [shape: f32[3,12,18], index: 1, kind: input, shape index: {}]   ;;  %s359_s0 = inlined_call_operand.vmem [shape: f32[3,2,12], index: 0, kind: input, shape index: {}]   ;;  %s360_s2 = inlined_call_operand.vmem [shape: f32[3,2,18], index: 2, kind: output, shape index: {}]  }
   0x1   :  { %273 = vmatprep.subr.mxu0 %v296_v0  ;;  %v15_v1 = vld [vmem:[%s358_s1 + $0x8] sm:$0xf]  ;;  %v14_v2 = vld [vmem:[%s358_s1] sm:$0xff]  ;;  %277 = vmatprep.mubr.msk.f32.mxu0 %vm297_vm1, %v296_v0  ;;  %v17_v4 = vld [vmem:[%s358_s1 + $0x18] sm:$0xf]  ;;  %vm250_vm3 = vcmask 140288  }
   0x2   :  { %274 = vmatpush3.msk.msra.mxu0 %vm24_vm0, %v15_v1  ;;  %280 = vmatprep.subr.mxu1 %v296_v0  ;;  %v11_v3 = vld [vmem:[%s359_s0] sm:$0x3]  ;;  %v19_v5 = vld [vmem:[%s358_s1 + $0x28] sm:$0xf]  ;;  %v16_v6 = vld [vmem:[%s358_s1 + $0x10] sm:$0xff] }
   0x3   :  { %275 = vmatprep.subr.mxu0 %v296_v0  ;;  %281 = vmatpush3.msk.msra.mxu1 %vm24_vm0, %v17_v4  ;;  %v12_v7 = vld [vmem:[%s359_s0 + $0x2] sm:$0x3]  ;;  %v13_v9 = vld [vmem:[%s359_s0 + $0x4] sm:$0x3] }
   0x4   :  { %276 = vmatpush3.msra.mxu0 %v14_v2  ;;  %282 = vmatprep.subr.mxu1 %v296_v0  ;;  %v18_v8 = vld [vmem:[%s358_s1 + $0x20] sm:$0xff] }
   0x5   :  { %278 = vmatmul.mubr.msk.f32.vlgmr.msra.gmra.mxu0 %vm20_vm2, %v11_v3  ;;  %287 = vmatprep.subr.mxu0 %v296_v0 }
   0x6   :  { %288 = vmatpush3.msk.msra.mxu0 %vm24_vm0, %v19_v5  ;;  %283 = vmatpush3.msra.mxu1 %v16_v6 }
   0x7   :  { %284 = vmatprep.mubr.msk.f32.mxu1 %vm297_vm1, %v296_v0  ;;  %289 = vmatprep.subr.mxu0 %v296_v0 }
   0x8   :  { %285 = vmatmul.mubr.msk.f32.vlgmr.msra.gmra.mxu1 %vm20_vm2, %v12_v7  ;;  %290 = vmatpush3.msra.mxu0 %v18_v8 }
   0x9   :  { %291 = vmatprep.mubr.msk.f32.mxu0 %vm297_vm1, %v296_v0 }
   0xa   :  { %292 = vmatmul.mubr.msk.f32.vlgmr.msra.gmra.mxu0 %vm20_vm2, %v13_v9 }
  0xc5   :  { %v94_v10 = vpop.f32.mrf.mxu0 }
  0xc6   :  { %251 = vst.msk [vmem:[%s360_s2] sm:$0x3] %vm250_vm3, %v94_v10 }
  0xc7   :  { %v279_v11 = vpop.f32.mrf.mxu0 }
  0xc8   :  { %v170_v12 = vpop.f32.mrf.mxu1 }
  0xc9   :  { %252 = vst.msk [vmem:[%s360_s2 + $0x2] sm:$0x3] %vm250_vm3, %v170_v12 }
  0xca   :  { %v246_v13 = vpop.f32.mrf.mxu0  ;;  %v286_v14 = vpop.f32.mrf.mxu1 }
  0xcb   :  { %253 = vst.msk [vmem:[%s360_s2 + $0x4] sm:$0x3] %vm250_vm3, %v246_v13 }
  0xcc   :  { %v293_v15 = vpop.f32.mrf.mxu0 }

</bundles_post_ra>
